<compile_context>
chip_gen: v7x
topology: tpu7x:2x2x1
jax: 0.10.0
libtpu: 0.0.40
codegen_flags: <defaults>
</compile_context>

<pallas_src>
import jax
import jax.numpy as jnp
from jax.experimental import pallas as pl
from jax.experimental.pallas import tpu as pltpu

# Layer dimensions from the nn.Linear definitions.
DIMS = [150, 128, 64, 32, 64, 128, 150]
D_IN = DIMS[0]
D_OUT = DIMS[-1]
HID_PAD = 128          # hidden widths zero-padded to one full lane group
SUBLANE = 8
DEFAULT_TILE_B = 1024  # large-batch tile (step-overhead amortization)


def _round_up(x, m):
    return ((x + m - 1) // m) * m


def _mlp_kernel(x_ref,
                w1, b1, w2, b2, w3, b3, w4, b4, w5, b5, w6, b6,
                out_ref):
    """Fused 6-layer MLP on one (tile_b, 150) batch tile; in-kernel bf16 cast."""
    h = x_ref[...].astype(jnp.bfloat16)  # (tile_b, 150)

    def layer(h, w_ref, b_ref, relu):
        # MXU matmul (bf16 in, f32 accumulate); bias add + ReLU in f32 on the VPU.
        y = jnp.dot(h, w_ref[...], preferred_element_type=jnp.float32) + b_ref[...]
        if relu:
            y = jnp.maximum(y, 0.0)
        return y

    h = layer(h, w1, b1, True).astype(jnp.bfloat16)
    h = layer(h, w2, b2, True).astype(jnp.bfloat16)
    h = layer(h, w3, b3, True).astype(jnp.bfloat16)
    h = layer(h, w4, b4, True).astype(jnp.bfloat16)
    h = layer(h, w5, b5, True).astype(jnp.bfloat16)
    out_ref[...] = layer(h, w6, b6, False).astype(out_ref.dtype)


def init_params(key):
    """Deterministic init mimicking torch.nn.Linear default (uniform +-1/sqrt(fan_in)).

    Weights stored as (in, out) so each layer is h = relu(h @ W + b); biases (1, out).
    """
    params = []
    for i in range(6):
        fan_in, fan_out = DIMS[i], DIMS[i + 1]
        key, kw, kb = jax.random.split(key, 3)
        bound = 1.0 / jnp.sqrt(jnp.float32(fan_in))
        w = jax.random.uniform(kw, (fan_in, fan_out), jnp.float32, -bound, bound)
        b = jax.random.uniform(kb, (1, fan_out), jnp.float32, -bound, bound)
        params.append((w, b))
    return params


def prepare_params(params):
    """One-time prep: bf16 weights / f32 biases; hidden dims zero-padded to 128.

    Input K (150) of layer 1 and output N (150) of layer 6 are kept unpadded so
    x and out stream at their true widths.  Zero padding is exact through the
    chain (zero weights/biases, ReLU(0)=0).
    """
    prepped = []
    for i, (w, b) in enumerate(params):
        in_true, out_true = DIMS[i], DIMS[i + 1]
        in_p = in_true if i == 0 else HID_PAD
        out_p = out_true if i == 5 else HID_PAD
        wp = jnp.zeros((in_p, out_p), jnp.bfloat16)
        wp = wp.at[:in_true, :out_true].set(w.astype(jnp.bfloat16))
        bp = jnp.zeros((1, out_p), jnp.float32)
        bp = bp.at[:, :out_true].set(b)
        prepped.append((wp, bp))
    return prepped


def net_forward(x, prepped_params, *, tile_b=DEFAULT_TILE_B):
    """x: any shape that flattens to (-1, 150), matching `x.view(-1, 150)`."""
    x2d = x.reshape(-1, D_IN)
    B = x2d.shape[0]

    # Tile selection: for small/medium batches aim for ~2 grid steps (keeps
    # both v7x TensorCores busy, avoids wasted tail work); sublane-aligned.
    if B <= 2 * tile_b:
        tile_b = max(SUBLANE, _round_up(pl.cdiv(B, 2), SUBLANE))
    grid = (pl.cdiv(B, tile_b),)

    flat_params = []
    in_specs = [pl.BlockSpec((tile_b, D_IN), lambda i: (i, 0))]
    resident = pl.BlockSpec(memory_space=pltpu.MemorySpace.VMEM)
    for (w, b) in prepped_params:
        flat_params.extend([w, b])
        in_specs.append(resident)   # whole weight, VMEM-resident
        in_specs.append(resident)   # whole bias, VMEM-resident

    out = pl.pallas_call(
        _mlp_kernel,
        out_shape=jax.ShapeDtypeStruct((B, D_OUT), jnp.float32),
        grid=grid,
        in_specs=in_specs,
        out_specs=pl.BlockSpec((tile_b, D_OUT), lambda i: (i, 0)),
        compiler_params=pltpu.CompilerParams(
            dimension_semantics=("parallel",)),
    )(x2d, *flat_params)
    return out


def net_forward_ref(x, params):
    """Pure-JAX reference mirroring the kernel's precision (bf16 operands, f32 accum)."""
    h = x.reshape(-1, D_IN).astype(jnp.float32)
    for i, (w, b) in enumerate(params):
        hb = h.astype(jnp.bfloat16).astype(jnp.float32)
        wb = w.astype(jnp.bfloat16).astype(jnp.float32)
        h = hb @ wb + b
        if i < 5:
            h = jnp.maximum(h, 0.0)
    return h


if __name__ == "__main__":
    key = jax.random.PRNGKey(0)
    kp, kx1, kx2 = jax.random.split(key, 3)

    params = init_params(kp)
    prepped_params = prepare_params(params)

    # Small batch: (4, 1, 150) flattens to (4, 150) -> single small grid step.
    x_small = jax.random.normal(kx1, (4, 1, 150), jnp.float32)
    out_small = jax.block_until_ready(net_forward(x_small, prepped_params))
    ref_small = net_forward_ref(x_small, params)
    assert out_small.shape == (4, 150), out_small.shape
    assert jnp.allclose(out_small, ref_small, atol=2e-3, rtol=2e-3), "small-batch mismatch"

    # Uneven larger batch (exercises the ragged cdiv grid): B = 529 -> 2 grid steps.
    x_big = jax.random.normal(kx2, (529, 150), jnp.float32)
    out_big = jax.block_until_ready(net_forward(x_big, prepped_params))
    ref_big = net_forward_ref(x_big, params)
    assert out_big.shape == (529, 150), out_big.shape
    assert jnp.allclose(out_big, ref_big, atol=2e-3, rtol=2e-3), "large-batch mismatch"

    print("KERNEL_OK")
</pallas_src>

<mosaic_0001>
module attributes {stable_mosaic.version = 11 : i64} {
  func.func @_mlp_kernel(%arg0: i32, %arg1: memref<8x150xf32, #tpu.memory_space<vmem>>, %arg2: memref<150x128xbf16, #tpu.memory_space<vmem>>, %arg3: memref<1x128xf32, #tpu.memory_space<vmem>>, %arg4: memref<128x128xbf16, #tpu.memory_space<vmem>>, %arg5: memref<1x128xf32, #tpu.memory_space<vmem>>, %arg6: memref<128x128xbf16, #tpu.memory_space<vmem>>, %arg7: memref<1x128xf32, #tpu.memory_space<vmem>>, %arg8: memref<128x128xbf16, #tpu.memory_space<vmem>>, %arg9: memref<1x128xf32, #tpu.memory_space<vmem>>, %arg10: memref<128x128xbf16, #tpu.memory_space<vmem>>, %arg11: memref<1x128xf32, #tpu.memory_space<vmem>>, %arg12: memref<128x150xbf16, #tpu.memory_space<vmem>>, %arg13: memref<1x150xf32, #tpu.memory_space<vmem>>, %arg14: memref<8x150xf32, #tpu.memory_space<vmem>>) attributes {dimension_semantics = [#tpu.dimension_semantics<parallel>], iteration_bounds = array<i64: 1>, scalar_prefetch = 0 : i64, scratch_operands = 0 : i64, tpu.core_type = #tpu.core_type<tc>, window_params = [{transform_indices = @transform_0, window_bounds = array<i64: 8, 150>}, {pipeline_mode = #tpu.pipeline_mode<synchronous>, transform_indices = @transform_1, window_bounds = array<i64: 150, 128>}, {pipeline_mode = #tpu.pipeline_mode<synchronous>, transform_indices = @transform_2, window_bounds = array<i64: 1, 128>}, {pipeline_mode = #tpu.pipeline_mode<synchronous>, transform_indices = @transform_3, window_bounds = array<i64: 128, 128>}, {pipeline_mode = #tpu.pipeline_mode<synchronous>, transform_indices = @transform_4, window_bounds = array<i64: 1, 128>}, {pipeline_mode = #tpu.pipeline_mode<synchronous>, transform_indices = @transform_5, window_bounds = array<i64: 128, 128>}, {pipeline_mode = #tpu.pipeline_mode<synchronous>, transform_indices = @transform_6, window_bounds = array<i64: 1, 128>}, {pipeline_mode = #tpu.pipeline_mode<synchronous>, transform_indices = @transform_7, window_bounds = array<i64: 128, 128>}, {pipeline_mode = #tpu.pipeline_mode<synchronous>, transform_indices = @transform_8, window_bounds = array<i64: 1, 128>}, {pipeline_mode = #tpu.pipeline_mode<synchronous>, transform_indices = @transform_9, window_bounds = array<i64: 128, 128>}, {pipeline_mode = #tpu.pipeline_mode<synchronous>, transform_indices = @transform_10, window_bounds = array<i64: 1, 128>}, {pipeline_mode = #tpu.pipeline_mode<synchronous>, transform_indices = @transform_11, window_bounds = array<i64: 128, 150>}, {pipeline_mode = #tpu.pipeline_mode<synchronous>, transform_indices = @transform_12, window_bounds = array<i64: 1, 150>}, {transform_indices = @transform_13, window_bounds = array<i64: 8, 150>}]} {
    %c0 = arith.constant 0 : index
    %c0_0 = arith.constant 0 : index
    %0 = vector.load %arg1[%c0, %c0_0] : memref<8x150xf32, #tpu.memory_space<vmem>>, vector<8x150xf32>
    %1 = arith.truncf %0 : vector<8x150xf32> to vector<8x150xbf16>
    %c0_1 = arith.constant 0 : index
    %c0_2 = arith.constant 0 : index
    %2 = vector.load %arg2[%c0_1, %c0_2] : memref<150x128xbf16, #tpu.memory_space<vmem>>, vector<150x128xbf16>
    %cst = arith.constant dense<0.000000e+00> : vector<8x128xf32>
    %3 = tpu.matmul %1, %2, %cst {dimension_numbers = #tpu.dot_dimension_numbers<[1], [0], [0], [1], [0, 0, 1, 1], [], []>} : vector<8x150xbf16>, vector<150x128xbf16>, vector<8x128xf32> -> vector<8x128xf32>
    %c0_3 = arith.constant 0 : index
    %c0_4 = arith.constant 0 : index
    %4 = vector.load %arg3[%c0_3, %c0_4] : memref<1x128xf32, #tpu.memory_space<vmem>>, vector<1x128xf32>
    %5 = vector.broadcast %4 : vector<1x128xf32> to vector<8x128xf32>
    %6 = arith.addf %3, %5 : vector<8x128xf32>
    %cst_5 = arith.constant 0.000000e+00 : f32
    %7 = vector.broadcast %cst_5 : f32 to vector<8x128xf32>
    %8 = arith.maximumf %6, %7 : vector<8x128xf32>
    %9 = arith.truncf %8 : vector<8x128xf32> to vector<8x128xbf16>
    %c0_6 = arith.constant 0 : index
    %c0_7 = arith.constant 0 : index
    %10 = vector.load %arg4[%c0_6, %c0_7] : memref<128x128xbf16, #tpu.memory_space<vmem>>, vector<128x128xbf16>
    %cst_8 = arith.constant dense<0.000000e+00> : vector<8x128xf32>
    %11 = tpu.matmul %9, %10, %cst_8 {dimension_numbers = #tpu.dot_dimension_numbers<[1], [0], [0], [1], [0, 0, 1, 1], [], []>} : vector<8x128xbf16>, vector<128x128xbf16>, vector<8x128xf32> -> vector<8x128xf32>
    %c0_9 = arith.constant 0 : index
    %c0_10 = arith.constant 0 : index
    %12 = vector.load %arg5[%c0_9, %c0_10] : memref<1x128xf32, #tpu.memory_space<vmem>>, vector<1x128xf32>
    %13 = vector.broadcast %12 : vector<1x128xf32> to vector<8x128xf32>
    %14 = arith.addf %11, %13 : vector<8x128xf32>
    %cst_11 = arith.constant 0.000000e+00 : f32
    %15 = vector.broadcast %cst_11 : f32 to vector<8x128xf32>
    %16 = arith.maximumf %14, %15 : vector<8x128xf32>
    %17 = arith.truncf %16 : vector<8x128xf32> to vector<8x128xbf16>
    %c0_12 = arith.constant 0 : index
    %c0_13 = arith.constant 0 : index
    %18 = vector.load %arg6[%c0_12, %c0_13] : memref<128x128xbf16, #tpu.memory_space<vmem>>, vector<128x128xbf16>
    %cst_14 = arith.constant dense<0.000000e+00> : vector<8x128xf32>
    %19 = tpu.matmul %17, %18, %cst_14 {dimension_numbers = #tpu.dot_dimension_numbers<[1], [0], [0], [1], [0, 0, 1, 1], [], []>} : vector<8x128xbf16>, vector<128x128xbf16>, vector<8x128xf32> -> vector<8x128xf32>
    %c0_15 = arith.constant 0 : index
    %c0_16 = arith.constant 0 : index
    %20 = vector.load %arg7[%c0_15, %c0_16] : memref<1x128xf32, #tpu.memory_space<vmem>>, vector<1x128xf32>
    %21 = vector.broadcast %20 : vector<1x128xf32> to vector<8x128xf32>
    %22 = arith.addf %19, %21 : vector<8x128xf32>
    %cst_17 = arith.constant 0.000000e+00 : f32
    %23 = vector.broadcast %cst_17 : f32 to vector<8x128xf32>
    %24 = arith.maximumf %22, %23 : vector<8x128xf32>
    %25 = arith.truncf %24 : vector<8x128xf32> to vector<8x128xbf16>
    %c0_18 = arith.constant 0 : index
    %c0_19 = arith.constant 0 : index
    %26 = vector.load %arg8[%c0_18, %c0_19] : memref<128x128xbf16, #tpu.memory_space<vmem>>, vector<128x128xbf16>
    %cst_20 = arith.constant dense<0.000000e+00> : vector<8x128xf32>
    %27 = tpu.matmul %25, %26, %cst_20 {dimension_numbers = #tpu.dot_dimension_numbers<[1], [0], [0], [1], [0, 0, 1, 1], [], []>} : vector<8x128xbf16>, vector<128x128xbf16>, vector<8x128xf32> -> vector<8x128xf32>
    %c0_21 = arith.constant 0 : index
    %c0_22 = arith.constant 0 : index
    %28 = vector.load %arg9[%c0_21, %c0_22] : memref<1x128xf32, #tpu.memory_space<vmem>>, vector<1x128xf32>
    %29 = vector.broadcast %28 : vector<1x128xf32> to vector<8x128xf32>
    %30 = arith.addf %27, %29 : vector<8x128xf32>
    %cst_23 = arith.constant 0.000000e+00 : f32
    %31 = vector.broadcast %cst_23 : f32 to vector<8x128xf32>
    %32 = arith.maximumf %30, %31 : vector<8x128xf32>
    %33 = arith.truncf %32 : vector<8x128xf32> to vector<8x128xbf16>
    %c0_24 = arith.constant 0 : index
    %c0_25 = arith.constant 0 : index
    %34 = vector.load %arg10[%c0_24, %c0_25] : memref<128x128xbf16, #tpu.memory_space<vmem>>, vector<128x128xbf16>
    %cst_26 = arith.constant dense<0.000000e+00> : vector<8x128xf32>
    %35 = tpu.matmul %33, %34, %cst_26 {dimension_numbers = #tpu.dot_dimension_numbers<[1], [0], [0], [1], [0, 0, 1, 1], [], []>} : vector<8x128xbf16>, vector<128x128xbf16>, vector<8x128xf32> -> vector<8x128xf32>
    %c0_27 = arith.constant 0 : index
    %c0_28 = arith.constant 0 : index
    %36 = vector.load %arg11[%c0_27, %c0_28] : memref<1x128xf32, #tpu.memory_space<vmem>>, vector<1x128xf32>
    %37 = vector.broadcast %36 : vector<1x128xf32> to vector<8x128xf32>
    %38 = arith.addf %35, %37 : vector<8x128xf32>
    %cst_29 = arith.constant 0.000000e+00 : f32
    %39 = vector.broadcast %cst_29 : f32 to vector<8x128xf32>
    %40 = arith.maximumf %38, %39 : vector<8x128xf32>
    %41 = arith.truncf %40 : vector<8x128xf32> to vector<8x128xbf16>
    %c0_30 = arith.constant 0 : index
    %c0_31 = arith.constant 0 : index
    %42 = vector.load %arg12[%c0_30, %c0_31] : memref<128x150xbf16, #tpu.memory_space<vmem>>, vector<128x150xbf16>
    %cst_32 = arith.constant dense<0.000000e+00> : vector<8x150xf32>
    %43 = tpu.matmul %41, %42, %cst_32 {dimension_numbers = #tpu.dot_dimension_numbers<[1], [0], [0], [1], [0, 0, 1, 1], [], []>} : vector<8x128xbf16>, vector<128x150xbf16>, vector<8x150xf32> -> vector<8x150xf32>
    %c0_33 = arith.constant 0 : index
    %c0_34 = arith.constant 0 : index
    %44 = vector.load %arg13[%c0_33, %c0_34] : memref<1x150xf32, #tpu.memory_space<vmem>>, vector<1x150xf32>
    %45 = vector.broadcast %44 : vector<1x150xf32> to vector<8x150xf32>
    %46 = arith.addf %43, %45 : vector<8x150xf32>
    %c0_35 = arith.constant 0 : index
    %c0_36 = arith.constant 0 : index
    %47 = vector.load %arg14[%c0_35, %c0_36] : memref<8x150xf32, #tpu.memory_space<vmem>>, vector<8x150xf32>
    tpu.vector_store %arg14[%c0_35, %c0_36], %46 {strides = array<i32>} : memref<8x150xf32, #tpu.memory_space<vmem>>, vector<8x150xf32>,
    return
  }
  func.func @transform_0(%arg0: i32) -> (i32, i32) {
    %c0_i32 = arith.constant 0 : i32
    %c0_i32_0 = arith.constant 0 : i32
    return %arg0, %c0_i32 : i32, i32
  }
  func.func @transform_1(%arg0: i32) -> (i32, i32) {
    %c0_i32 = arith.constant 0 : i32
    %c0_i32_0 = arith.constant 0 : i32
    %c0_i32_1 = arith.constant 0 : i32
    return %c0_i32, %c0_i32_0 : i32, i32
  }
  func.func @transform_2(%arg0: i32) -> (i32, i32) {
    %c0_i32 = arith.constant 0 : i32
    %c0_i32_0 = arith.constant 0 : i32
    %c0_i32_1 = arith.constant 0 : i32
    return %c0_i32, %c0_i32_0 : i32, i32
  }
  func.func @transform_3(%arg0: i32) -> (i32, i32) {
    %c0_i32 = arith.constant 0 : i32
    %c0_i32_0 = arith.constant 0 : i32
    %c0_i32_1 = arith.constant 0 : i32
    return %c0_i32, %c0_i32_0 : i32, i32
  }
  func.func @transform_4(%arg0: i32) -> (i32, i32) {
    %c0_i32 = arith.constant 0 : i32
    %c0_i32_0 = arith.constant 0 : i32
    %c0_i32_1 = arith.constant 0 : i32
    return %c0_i32, %c0_i32_0 : i32, i32
  }
  func.func @transform_5(%arg0: i32) -> (i32, i32) {
    %c0_i32 = arith.constant 0 : i32
    %c0_i32_0 = arith.constant 0 : i32
    %c0_i32_1 = arith.constant 0 : i32
    return %c0_i32, %c0_i32_0 : i32, i32
  }
  func.func @transform_6(%arg0: i32) -> (i32, i32) {
    %c0_i32 = arith.constant 0 : i32
    %c0_i32_0 = arith.constant 0 : i32
    %c0_i32_1 = arith.constant 0 : i32
    return %c0_i32, %c0_i32_0 : i32, i32
  }
  func.func @transform_7(%arg0: i32) -> (i32, i32) {
    %c0_i32 = arith.constant 0 : i32
    %c0_i32_0 = arith.constant 0 : i32
    %c0_i32_1 = arith.constant 0 : i32
    return %c0_i32, %c0_i32_0 : i32, i32
  }
  func.func @transform_8(%arg0: i32) -> (i32, i32) {
    %c0_i32 = arith.constant 0 : i32
    %c0_i32_0 = arith.constant 0 : i32
    %c0_i32_1 = arith.constant 0 : i32
    return %c0_i32, %c0_i32_0 : i32, i32
  }
  func.func @transform_9(%arg0: i32) -> (i32, i32) {
    %c0_i32 = arith.constant 0 : i32
    %c0_i32_0 = arith.constant 0 : i32
    %c0_i32_1 = arith.constant 0 : i32
    return %c0_i32, %c0_i32_0 : i32, i32
  }
  func.func @transform_10(%arg0: i32) -> (i32, i32) {
    %c0_i32 = arith.constant 0 : i32
    %c0_i32_0 = arith.constant 0 : i32
    %c0_i32_1 = arith.constant 0 : i32
    return %c0_i32, %c0_i32_0 : i32, i32
  }
  func.func @transform_11(%arg0: i32) -> (i32, i32) {
    %c0_i32 = arith.constant 0 : i32
    %c0_i32_0 = arith.constant 0 : i32
    %c0_i32_1 = arith.constant 0 : i32
    return %c0_i32, %c0_i32_0 : i32, i32
  }
  func.func @transform_12(%arg0: i32) -> (i32, i32) {
    %c0_i32 = arith.constant 0 : i32
    %c0_i32_0 = arith.constant 0 : i32
    %c0_i32_1 = arith.constant 0 : i32
    return %c0_i32, %c0_i32_0 : i32, i32
  }
  func.func @transform_13(%arg0: i32) -> (i32, i32) {
    %c0_i32 = arith.constant 0 : i32
    %c0_i32_0 = arith.constant 0 : i32
    return %arg0, %c0_i32 : i32, i32
  }
}

</mosaic_0001>

<bundles_post_ra>
// kernel: tpu_custom_call.1
= control target key start
LH: loop header
LB: loop body
LE: loop exit
PB: predicated region body
PF: predicated region fallthrough
CT: control target
= control target key end

     0   :  { %18 = vsyncpa [#allocation3], 0  ;;  %s1551_s0 = inlined_call_operand.hbm [shape: f32[4,150], index: 0, kind: input, shape index: {}]   ;;  %s1552_s1 = inlined_call_operand.vmem [shape: bf16[150,128], index: 1, kind: input, shape index: {}]   ;;  %s1553_s2 = inlined_call_operand.vmem [shape: f32[1,128], index: 2, kind: input, shape index: {}]   ;;  %s1554_s3 = inlined_call_operand.vmem [shape: bf16[128,128], index: 3, kind: input, shape index: {}]   ;;  %s1555_s4 = inlined_call_operand.vmem [shape: f32[1,128], index: 4, kind: input, shape index: {}]   ;;  %s1556_s5 = inlined_call_operand.vmem [shape: bf16[128,128], index: 5, kind: input, shape index: {}]   ;;  %s1557_s6 = inlined_call_operand.vmem [shape: f32[1,128], index: 6, kind: input, shape index: {}]   ;;  %s1558_s7 = inlined_call_operand.hbm [shape: bf16[128,128], index: 7, kind: input, shape index: {}]   ;;  %s1559_s8 = inlined_call_operand.vmem [shape: f32[1,128], index: 8, kind: input, shape index: {}]   ;;  %s1560_s9 = inlined_call_operand.hbm [shape: bf16[128,128], index: 9, kind: input, shape index: {}]   ;;  %s1561_s10 = inlined_call_operand.vmem [shape: f32[1,128], index: 10, kind: input, shape index: {}]   ;;  %s1562_s11 = inlined_call_operand.vmem [shape: bf16[128,150], index: 11, kind: input, shape index: {}]   ;;  %s1563_s12 = inlined_call_operand.vmem [shape: f32[1,150], index: 12, kind: input, shape index: {}]   ;;  %s1564_s13 = inlined_call_operand.hbm [shape: f32[4,150], index: 13, kind: output, shape index: {}]  }
   0x1   :  { %19 = vsyncpa [#allocation6], 0 }
   0x2   :  { %20 = vsyncpa [#allocation4], 0 }
   0x3   :  { %25 = vsyncadd [#allocation3], 128  ;;  %s1214_s25 = smov [#allocation5]   ;;  %s1120_s29 = scalar_lea.hbm %s1558_s7, 1024 }
   0x4   :  { %s50_s26 = sshll.u32 %s1214_s25, 4  ;;  %p1121_p0 = scmp.ne.s32.totalorder %s1558_s7, %s1120_s29  ;;  %s51_s26 = int_to_ptr.vmem [resolvable:$true] %s50_s26 }
   0x5   :  { %p1124_p1 = scmp.lt.u32.totalorder %s1120_s29, %s1558_s7 }
   0x7   :  { %p1126_p2 = pnand %p1124_p1, %p1121_p0 }
   0x9   :  { %1129 = shalt.err (!%p1126_p2)
}
   0xa   :  { %s1130_s17 = scalar_lea.vmem %s51_s26, 1024  ;;  %p1135_p4 = scmp.lt.s32.totalorder %s51_s26, %s51_s26 }
   0xb   :  { %p1131_p3 = scmp.ne.s32.totalorder %s51_s26, %s1130_s17  ;;  %p1136_p5 = scmp.lt.s32.totalorder %s1130_s17, %s1130_s17 }
   0xd   :  { %p1137_p6 = por %p1136_p5, %p1135_p4 }
   0xf   :  { %p1138_p7 = pnand %p1137_p6, %p1131_p3 }
  0x11   :  { %1141 = shalt.err (!%p1138_p7)
}
  0x12   :  { %s1215_s18 = smov 64   ;;  %s1216_s19 = smov 4  }
  0x13   :  { %56 = dma.hbm_to_vmem [thread:$0]  %s1558_s7, 1024, %s51_s26, [#allocation6], %s1215_s18, %s1215_s18, %s1216_s19  }
  0x14   :  { %s1217_s22 = smov [#allocation2]   ;;  %s1142_s27 = scalar_lea.hbm %s1551_s0, 128 }
  0x15   :  { %s26_s23 = sshll.u32 %s1217_s22, 4  ;;  %p1143_p8 = scmp.ne.s32.totalorder %s1551_s0, %s1142_s27  ;;  %s27_s23 = int_to_ptr.vmem [resolvable:$true] %s26_s23 }
  0x16   :  { %p1146_p9 = scmp.lt.u32.totalorder %s1142_s27, %s1551_s0 }
  0x18   :  { %p1148_p10 = pnand %p1146_p9, %p1143_p8 }
  0x1a   :  { %1151 = shalt.err (!%p1148_p10)
}
  0x1b   :  { %s1152_s15 = scalar_lea.vmem %s27_s23, 128  ;;  %s1156_s7 = scalar_lea.vmem %s27_s23, 256 }
  0x1c   :  { %p1153_p11 = scmp.ne.s32.totalorder %s27_s23, %s1152_s15  ;;  %p1157_p12 = scmp.lt.s32.totalorder %s27_s23, %s27_s23 }
  0x1d   :  { %p1158_p13 = scmp.lt.s32.totalorder %s1156_s7, %s1152_s15 }
  0x1f   :  { %p1159_p0 = por %p1158_p13, %p1157_p12 }
  0x21   :  { %p1160_p1 = pnand %p1159_p0, %p1153_p11 }
  0x23   :  { %1163 = shalt.err (!%p1160_p1)
}
  0x24   :  { %s1218_s26 = smov 128   ;;  %s1219_s16 = smov 8  }
  0x25   :  { %32 = dma.hbm_to_vmem [thread:$0]  %s1551_s0, 128, %s27_s23, [#allocation3], %s1218_s26, %s1218_s26, %s1219_s16  }
  0x26   :  { %s1220_s21 = smov [#allocation7]   ;;  %s1164_s27 = scalar_lea.hbm %s1560_s9, 1024 }
  0x27   :  { %s64_s22 = sshll.u32 %s1220_s21, 4  ;;  %p1165_p2 = scmp.ne.s32.totalorder %s1560_s9, %s1164_s27  ;;  %s65_s22 = int_to_ptr.vmem [resolvable:$true] %s64_s22 }
  0x28   :  { %p1168_p3 = scmp.lt.u32.totalorder %s1164_s27, %s1560_s9 }
  0x2a   :  { %p1170_p4 = pnand %p1168_p3, %p1165_p2 }
  0x2c   :  { %1173 = shalt.err (!%p1170_p4)
}
  0x2d   :  { %s1174_s15 = scalar_lea.vmem %s65_s22, 1024  ;;  %p1179_p6 = scmp.lt.s32.totalorder %s65_s22, %s65_s22 }
  0x2e   :  { %p1175_p5 = scmp.ne.s32.totalorder %s65_s22, %s1174_s15  ;;  %p1180_p7 = scmp.lt.s32.totalorder %s1174_s15, %s1174_s15 }
  0x30   :  { %p1181_p8 = por %p1180_p7, %p1179_p6 }
  0x32   :  { %p1182_p9 = pnand %p1181_p8, %p1175_p5 }
  0x34   :  { %1185 = shalt.err (!%p1182_p9)
}
  0x35   :  { %70 = dma.hbm_to_vmem [thread:$0]  %s1560_s9, 1024, %s65_s22, [#allocation6], %s1215_s18, %s1215_s18, %s1216_s19  }
  0x36   :  { %1208 = dma.done.wait [#allocation3], 256  }
  0x37   :  { %1209 = vsyncadd [#allocation3], 4294967040 }
  0x38   :  { %1210 = dma.done.wait [#allocation6], 2048  }
  0x39   :  { %1211 = vsyncadd [#allocation6], 4294965248  ;;  %v1221_v0 = vmov 0   ;;  %v1222_v1 = vmov 0.0   ;;  %v1051_v2 = vld [vmem:[%s1552_s1] sm:$0xff]   ;;  %v1052_v3 = vld [vmem:[%s1552_s1 + $0x8] sm:$0xff]  }
  0x3a   :  { %188 = vmatprep.subr.bf16.mxu0 %v1221_v0  ;;  %960 = vmatprep.subr.bf16.mxu1 %v1222_v1  ;;  %v1053_v4 = vld [vmem:[%s1552_s1 + $0x10] sm:$0xff]   ;;  %v1054_v5 = vld [vmem:[%s1552_s1 + $0x18] sm:$0xff]   ;;  %v1063_v6 = vld [vmem:[#allocation2 + $0x4] ss:$8 sps:$4 sm:$0xff]   ;;  %vm180_vm0 = vcmask 179200   ;;  %vm184_vm1 = vcmask 1042432  }
  0x3b   :  { %189 = vmatpush1.bf16.msra.mxu0 %v1051_v2  ;;  %v1064_v7 = vld [vmem:[%s1554_s3] sm:$0xff]   ;;  %v96_v8 = vpack.c.bf16 %v1063_v6, %v1063_v6  ;;  %v1065_v9 = vld [vmem:[%s1554_s3 + $0x8] sm:$0xff]   ;;  %v1066_v12 = vld [vmem:[%s1554_s3 + $0x10] sm:$0xff]   ;;  %vm1223_vm2 = vmmov 0   ;;  %vm837_vm3 = vcmask 1043456   ;;  %vm838_vm4 = vcmask 179204  }
  0x3c   :  { %190 = vmatprep.subr.bf16.mxu0 %v1221_v0  ;;  %961 = vmatpush3.bf16.msra.mxu1 %v1064_v7  ;;  %v1055_v10 = vld [vmem:[%s1552_s1 + $0x20] sm:$0xff]   ;;  %v1056_v11 = vld [vmem:[%s1552_s1 + $0x28] sm:$0xff]   ;;  %v1067_v13 = vld [vmem:[%s1554_s3 + $0x18] sm:$0xff]  }
  0x3d   :  { %871 = vmatprep.mubr.msk.bf16.mxu0 %vm180_vm0, %v96_v8  ;;  %962 = vmatprep.subr.bf16.mxu1 %v1222_v1  ;;  %v1057_v14 = vld [vmem:[%s1552_s1 + $0x30] sm:$0xff]   ;;  %v1068_v15 = vld [vmem:[%s1554_s3 + $0x20] sm:$0xff]   ;;  %v1058_v16 = vld [vmem:[%s1552_s1 + $0x38] sm:$0xff]  }
  0x3e   :  { %v1069_v17 = vld [vmem:[%s1554_s3 + $0x28] sm:$0xff]   ;;  %v1059_v18 = vld [vmem:[%s1552_s1 + $0x40] sm:$0xff]   ;;  %v1070_v23 = vld [vmem:[%s1554_s3 + $0x30] sm:$0xff]   ;;  %976 = vmatprep.mubr.msk.bf16.mxu1 %vm1223_vm2, %v1222_v1 }
  0x3f   :  { %191 = vmatpush1.bf16.msra.mxu0 %v1052_v3  ;;  %v1060_v19 = vld [vmem:[%s1552_s1 + $0x48] ss:$0 sps:$4 sm:$0x77]   ;;  %v1071_v24 = vld [vmem:[%s1554_s3 + $0x38] sm:$0xff]   ;;  %v860_v25 = vld [vmem:[%s1553_s2] ss:$0 sm:$0xff] }
  0x40   :  { %192 = vmatprep.subr.bf16.mxu0 %v1221_v0  ;;  %963 = vmatpush3.bf16.msra.mxu1 %v1065_v9  ;;  %v1061_v20 = vld [vmem:[#allocation2] ss:$8 sps:$4 sm:$0xff]   ;;  %v186_v21 = vsel %vm184_vm1, %v1060_v19, 0  ;;  %v1074_v35 = vld [vmem:[%s1556_s5 + $0x10] sm:$0xff]   ;;  %v1075_v36 = vld [vmem:[%s1556_s5 + $0x18] sm:$0xff]  }
  0x41   :  { %964 = vmatprep.subr.bf16.mxu1 %v1222_v1  ;;  %v95_v22 = vpack.c.bf16 %v1061_v20, %v1061_v20  ;;  %v1072_v32 = vld [vmem:[%s1556_s5] sm:$0xff]   ;;  %v1073_v34 = vld [vmem:[%s1556_s5 + $0x8] sm:$0xff]   ;;  %v1078_v39 = vld [vmem:[%s1556_s5 + $0x30] sm:$0xff]  }
  0x42   :  { %v1076_v37 = vld [vmem:[%s1556_s5 + $0x20] sm:$0xff]   ;;  %v1077_v38 = vld [vmem:[%s1556_s5 + $0x28] sm:$0xff]   ;;  %v1079_v40 = vld [vmem:[%s1556_s5 + $0x38] sm:$0xff]  }
  0x43   :  { %193 = vmatpush1.bf16.msra.mxu0 %v1053_v4  ;;  %v1080_v41 = vld [vmem:[#allocation5] sm:$0xff]   ;;  %v1081_v42 = vld [vmem:[#allocation5 + $0x8] sm:$0xff]   ;;  %v1082_v43 = vld [vmem:[#allocation5 + $0x10] sm:$0xff]  }
  0x44   :  { %194 = vmatprep.subr.bf16.mxu0 %v1221_v0  ;;  %965 = vmatpush3.bf16.msra.mxu1 %v1066_v12  ;;  %v1083_v44 = vld [vmem:[#allocation5 + $0x18] sm:$0xff]   ;;  %v1084_v45 = vld [vmem:[#allocation5 + $0x20] sm:$0xff]   ;;  %v1085_v46 = vld [vmem:[#allocation5 + $0x28] sm:$0xff]  }
  0x45   :  { %966 = vmatprep.subr.bf16.mxu1 %v1222_v1  ;;  %v872_v47 = vld [vmem:[%s1555_s4] ss:$0 sm:$0xff]  ;;  %v1087_v56 = vld [vmem:[#allocation5 + $0x38] sm:$0xff]   ;;  %v1088_v57 = vld [vmem:[#allocation7] sm:$0xff]  }
  0x46   :  { %v1086_v55 = vld [vmem:[#allocation5 + $0x30] sm:$0xff]   ;;  %v1089_v58 = vld [vmem:[#allocation7 + $0x8] sm:$0xff]   ;;  %v1091_v60 = vld [vmem:[#allocation7 + $0x18] sm:$0xff]  }
  0x47   :  { %195 = vmatpush1.bf16.msra.mxu0 %v1054_v5  ;;  %v1090_v59 = vld [vmem:[#allocation7 + $0x10] sm:$0xff]   ;;  %v1092_v61 = vld [vmem:[#allocation7 + $0x20] sm:$0xff]   ;;  %v1093_v62 = vld [vmem:[#allocation7 + $0x28] sm:$0xff]  }
  0x48   :  { %196 = vmatprep.subr.bf16.mxu0 %v1221_v0  ;;  %967 = vmatpush3.bf16.msra.mxu1 %v1067_v13  ;;  %v881_v63 = vld [vmem:[%s1557_s6] ss:$0 sm:$0xff]  ;;  %v1098_v12 = vld [vmem:[%s1562_s11 + $0x4] ss:$8 sps:$4 sm:$0xff]   ;;  %v1101_v13 = vld [vmem:[%s1562_s11 + $0x14] ss:$8 sps:$4 sm:$0xff]  }
  0x49   :  { %968 = vmatprep.subr.bf16.mxu1 %v1222_v1  ;;  %v1094_v9 = vld [vmem:[#allocation7 + $0x30] sm:$0xff]   ;;  %v1113_v19 = vld [vmem:[%s1562_s11 + $0x54] ss:$8 sps:$4 sm:$0xff]   ;;  %v1111_v20 = vld [vmem:[%s1562_s11 + $0x50] ss:$8 sps:$4 sm:$0xff]  }
  0x4a   :  { %vm839_vm5 = vmor %vm838_vm4, %vm837_vm3 }
  0x4b   :  { %197 = vmatpush1.bf16.msra.mxu0 %v1055_v10  ;;  %v1095_v10 = vld [vmem:[#allocation7 + $0x38] sm:$0xff]  }
  0x4c   :  { %198 = vmatprep.subr.bf16.mxu0 %v1221_v0  ;;  %969 = vmatpush3.bf16.msra.mxu1 %v1068_v15  ;;  %v1107_v15 = vld [vmem:[%s1562_s11 + $0x34] ss:$8 sps:$4 sm:$0xff]  }
  0x4d   :  { %970 = vmatprep.subr.bf16.mxu1 %v1222_v1 }
  0x4f   :  { %199 = vmatpush1.bf16.msra.mxu0 %v1056_v11  ;;  %v1096_v11 = vld [vmem:[%s1562_s11] ss:$8 sps:$4 sm:$0xff]  }
  0x50   :  { %200 = vmatprep.subr.bf16.mxu0 %v1221_v0  ;;  %971 = vmatpush3.bf16.msra.mxu1 %v1069_v17  ;;  %v1110_v17 = vld [vmem:[%s1562_s11 + $0x44] ss:$8 sps:$4 sm:$0xff]  }
  0x51   :  { %972 = vmatprep.subr.bf16.mxu1 %v1222_v1 }
  0x53   :  { %201 = vmatpush1.bf16.msra.mxu0 %v1057_v14  ;;  %v1102_v14 = vld [vmem:[%s1562_s11 + $0x20] ss:$8 sps:$4 sm:$0xff]  }
  0x54   :  { %202 = vmatprep.subr.bf16.mxu0 %v1221_v0  ;;  %973 = vmatpush3.bf16.msra.mxu1 %v1070_v23  ;;  %v890_v23 = vld [vmem:[%s1559_s8] ss:$0 sm:$0xff] }
  0x55   :  { %974 = vmatprep.subr.bf16.mxu1 %v1222_v1 }
  0x57   :  { %203 = vmatpush1.bf16.msra.mxu0 %v1058_v16  ;;  %v1105_v16 = vld [vmem:[%s1562_s11 + $0x30] ss:$8 sps:$4 sm:$0xff]  }
  0x58   :  { %204 = vmatprep.subr.bf16.mxu0 %v1221_v0  ;;  %975 = vmatpush3.bf16.msra.mxu1 %v1071_v24 }
  0x59   :  { %980 = vmatprep.subr.bf16.mxu1 %v1222_v1 }
  0x5b   :  { %205 = vmatpush1.bf16.msra.mxu0 %v1059_v18  ;;  %v1108_v18 = vld [vmem:[%s1562_s11 + $0x40] ss:$8 sps:$4 sm:$0xff]  }
  0x5c   :  { %206 = vmatprep.subr.bf16.mxu0 %v1221_v0 }
  0x5f   :  { %207 = vmatpush1.bf16.msra.mxu0 %v186_v21  ;;  %v1116_v21 = vld [vmem:[%s1562_s11 + $0x64] ss:$8 sps:$4 sm:$0xff]  }
  0x60   :  { %1000 = vmatprep.subr.bf16.mxu0 %v1222_v1 }
  0x62   :  { %221 = vmatmul.mubr.bf16.vlgmr.msra.gmra.mrb[0].mxu0 %v95_v22  ;;  %v1114_v22 = vld [vmem:[%s1562_s11 + $0x60] ss:$8 sps:$4 sm:$0xff]  }
  0x63   :  { %1016 = vmatprep.mubr.msk.bf16.mxu0 %vm1223_vm2, %v1222_v1  ;;  %1001 = vmatpush3.bf16.msra.mxu0 %v1080_v41  ;;  %v700_v41 = vlaneseq }
  0x64   :  { %1002 = vmatprep.subr.bf16.mxu0 %v1222_v1 }
  0x67   :  { %1003 = vmatpush3.bf16.msra.mxu0 %v1081_v42  ;;  %v701_v42 = vshrl.u32 %v700_v41, 7 }
  0x68   :  { %1004 = vmatprep.subr.bf16.mxu0 %v1222_v1 }
  0x6b   :  { %1005 = vmatpush3.bf16.msra.mxu0 %v1082_v43  ;;  %v702_v43 = vsub.s32 0, %v701_v42 }
  0x6c   :  { %1006 = vmatprep.subr.bf16.mxu0 %v1222_v1 }
  0x6f   :  { %1007 = vmatpush3.bf16.msra.mxu0 %v1083_v44  ;;  %v698_v44 = vld [vmem:[%s1563_s12] sm:$0x3] }
  0x70   :  { %1008 = vmatprep.subr.bf16.mxu0 %v1222_v1 }
  0x73   :  { %1009 = vmatpush3.bf16.msra.mxu0 %v1084_v45  ;;  %v706_v45 = vsub.s32 1, %v701_v42 }
  0x74   :  { %1010 = vmatprep.subr.bf16.mxu0 %v1222_v1 }
  0x77   :  { %1011 = vmatpush3.bf16.msra.mxu0 %v1085_v46  ;;  %v703_v46 = vrot.slane %v698_v44, %v702_v43 }
  0x78   :  { %1012 = vmatprep.subr.bf16.mxu0 %v1222_v1 }
  0x7b   :  { %1013 = vmatpush3.bf16.msra.mxu0 %v1086_v55 }
  0x7c   :  { %1014 = vmatprep.subr.bf16.mxu0 %v1222_v1 }
  0x7f   :  { %1015 = vmatpush3.bf16.msra.mxu0 %v1087_v56 }
  0x80   :  { %790 = vmatprep.subr.bf16.mxu0 %v1098_v12 }
 0x135   :  { %v222_v26 = vpop.f32.mrb[0].mxu0 }
 0x136   :  { %v223_v27 = vadd.f32 %v860_v25, %v222_v26  ;;  %v224_v28 = vpop.f32.mrb[1].mxu0 }
 0x137   :  { %v225_v29 = vpop.f32.mrb[2].mxu0 }
 0x138   :  { %v228_v30 = vmax.f32 %v223_v27, 0.0  ;;  %v226_v31 = vpop.f32.mrb[3].mxu0 }
 0x139   :  { %v1119_v31 = vld [vmem:[%s1562_s11 + $0x74] ss:$8 sps:$4 sm:$0xff]  }
 0x13a   :  { %v229_v33 = vpack.c.bf16 %v228_v30, %v228_v30 }
 0x13c   :  { %977 = vmatmul.mubr.bf16.vlgmr.msra.gmra.mrb[0].mxu1 %v229_v33  ;;  %v899_v33 = vld [vmem:[%s1561_s10] ss:$0 sm:$0xff] }
 0x13d   :  { %981 = vmatpush3.bf16.msra.mxu1 %v1072_v32  ;;  %996 = vmatprep.mubr.msk.bf16.mxu1 %vm1223_vm2, %v1222_v1  ;;  %v1117_v32 = vld [vmem:[%s1562_s11 + $0x70] ss:$8 sps:$4 sm:$0xff]  }
 0x13e   :  { %982 = vmatprep.subr.bf16.mxu1 %v1222_v1 }
 0x141   :  { %983 = vmatpush3.bf16.msra.mxu1 %v1073_v34 }
 0x142   :  { %984 = vmatprep.subr.bf16.mxu1 %v1222_v1 }
 0x145   :  { %985 = vmatpush3.bf16.msra.mxu1 %v1074_v35 }
 0x146   :  { %986 = vmatprep.subr.bf16.mxu1 %v1222_v1 }
 0x149   :  { %987 = vmatpush3.bf16.msra.mxu1 %v1075_v36 }
 0x14a   :  { %988 = vmatprep.subr.bf16.mxu1 %v1222_v1 }
 0x14d   :  { %989 = vmatpush3.bf16.msra.mxu1 %v1076_v37 }
 0x14e   :  { %990 = vmatprep.subr.bf16.mxu1 %v1222_v1 }
 0x151   :  { %991 = vmatpush3.bf16.msra.mxu1 %v1077_v38 }
 0x152   :  { %992 = vmatprep.subr.bf16.mxu1 %v1222_v1 }
 0x155   :  { %993 = vmatpush3.bf16.msra.mxu1 %v1078_v39 }
 0x156   :  { %994 = vmatprep.subr.bf16.mxu1 %v1222_v1 }
 0x159   :  { %995 = vmatpush3.bf16.msra.mxu1 %v1079_v40 }
 0x15a   :  { %1020 = vmatprep.subr.bf16.mxu1 %v1222_v1 }
 0x20f   :  { %v335_v48 = vpop.f32.mrb[0].mxu1 }
 0x210   :  { %v336_v49 = vadd.f32 %v872_v47, %v335_v48  ;;  %v978_v50 = vpop.f32.mrb[1].mxu1  ;;  %v707_v47 = vrot.slane %v698_v44, %v706_v45 }
 0x211   :  { %v338_v51 = vpop.f32.mrb[2].mxu1 }
 0x212   :  { %v341_v52 = vmax.f32 %v336_v49, 0.0  ;;  %v979_v53 = vpop.f32.mrb[3].mxu1 }
 0x214   :  { %v342_v54 = vpack.c.bf16 %v341_v52, %v341_v52 }
 0x216   :  { %997 = vmatmul.mubr.bf16.vlgmr.msra.gmra.mrb[4].mxu1 %v342_v54 }
 0x217   :  { %1036 = vmatprep.mubr.msk.bf16.mxu1 %vm1223_vm2, %v1222_v1  ;;  %1021 = vmatpush3.bf16.msra.mxu1 %v1088_v57 }
 0x218   :  { %1022 = vmatprep.subr.bf16.mxu1 %v1222_v1 }
 0x21b   :  { %1023 = vmatpush3.bf16.msra.mxu1 %v1089_v58 }
 0x21c   :  { %1024 = vmatprep.subr.bf16.mxu1 %v1222_v1 }
 0x21f   :  { %1025 = vmatpush3.bf16.msra.mxu1 %v1090_v59 }
 0x220   :  { %1026 = vmatprep.subr.bf16.mxu1 %v1222_v1 }
 0x223   :  { %1027 = vmatpush3.bf16.msra.mxu1 %v1091_v60 }
 0x224   :  { %1028 = vmatprep.subr.bf16.mxu1 %v1222_v1 }
 0x227   :  { %1029 = vmatpush3.bf16.msra.mxu1 %v1092_v61 }
 0x228   :  { %1030 = vmatprep.subr.bf16.mxu1 %v1222_v1 }
 0x22b   :  { %1031 = vmatpush3.bf16.msra.mxu1 %v1093_v62 }
 0x22c   :  { %1032 = vmatprep.subr.bf16.mxu1 %v1222_v1 }
 0x22f   :  { %1033 = vmatpush3.bf16.msra.mxu1 %v1094_v9 }
 0x230   :  { %1034 = vmatprep.subr.bf16.mxu1 %v1222_v1  ;;  %v1104_v1 = vld [vmem:[%s1562_s11 + $0x24] ss:$8 sps:$4 sm:$0xff]  }
 0x233   :  { %1035 = vmatpush3.bf16.msra.mxu1 %v1095_v10 }
 0x2e9   :  { %v448_v2 = vpop.f32.mrb[4].mxu1 }
 0x2ea   :  { %v449_v3 = vadd.f32 %v881_v63, %v448_v2  ;;  %v998_v4 = vpop.f32.mrb[5].mxu1 }
 0x2eb   :  { %v451_v5 = vpop.f32.mrb[6].mxu1 }
 0x2ec   :  { %v454_v6 = vmax.f32 %v449_v3, 0.0  ;;  %v999_v7 = vpop.f32.mrb[7].mxu1 }
 0x2ee   :  { %v455_v8 = vpack.c.bf16 %v454_v6, %v454_v6 }
 0x2f0   :  { %1017 = vmatmul.mubr.bf16.vlgmr.msra.gmra.mrb[4].mxu0 %v455_v8 }
 0x2f1   :  { %822 = vmatprep.mubr.bf16.mxu0 %v1221_v0  ;;  %791 = vmatpush1.bf16.msra.mxu0 %v1096_v11  ;;  %v1099_v0 = vld [vmem:[%s1562_s11 + $0x10] ss:$8 sps:$4 sm:$0xff]  }
 0x2f2   :  { %792 = vmatprep.subr.bf16.mxu0 %v1101_v13 }
 0x2f5   :  { %793 = vmatpush1.bf16.msra.mxu0 %v1099_v0 }
 0x2f6   :  { %794 = vmatprep.subr.bf16.mxu0 %v1104_v1 }
 0x2f9   :  { %795 = vmatpush1.bf16.msra.mxu0 %v1102_v14 }
 0x2fa   :  { %796 = vmatprep.subr.bf16.mxu0 %v1107_v15 }
 0x2fd   :  { %797 = vmatpush1.bf16.msra.mxu0 %v1105_v16 }
 0x2fe   :  { %798 = vmatprep.subr.bf16.mxu0 %v1110_v17 }
 0x301   :  { %799 = vmatpush1.bf16.msra.mxu0 %v1108_v18 }
 0x302   :  { %800 = vmatprep.subr.bf16.mxu0 %v1113_v19 }
 0x305   :  { %801 = vmatpush1.bf16.msra.mxu0 %v1111_v20 }
 0x306   :  { %802 = vmatprep.subr.bf16.mxu0 %v1116_v21 }
 0x309   :  { %803 = vmatpush1.bf16.msra.mxu0 %v1114_v22 }
 0x30a   :  { %804 = vmatprep.subr.bf16.mxu0 %v1119_v31 }
 0x30d   :  { %805 = vmatpush1.bf16.msra.mxu0 %v1117_v32 }
 0x3c3   :  { %v561_v24 = vpop.f32.mrb[4].mxu0 }
 0x3c4   :  { %v562_v25 = vadd.f32 %v890_v23, %v561_v24  ;;  %v1018_v26 = vpop.f32.mrb[5].mxu0 }
 0x3c5   :  { %v564_v27 = vpop.f32.mrb[6].mxu0 }
 0x3c6   :  { %v567_v28 = vmax.f32 %v562_v25, 0.0  ;;  %v1019_v29 = vpop.f32.mrb[7].mxu0 }
 0x3c8   :  { %v568_v30 = vpack.c.bf16 %v567_v28, %v567_v28 }
 0x3ca   :  { %1037 = vmatmul.mubr.bf16.vlgmr.msra.gmra.mrb[8].mxu1 %v568_v30 }
 0x49d   :  { %v674_v34 = vpop.f32.mrb[8].mxu1 }
 0x49e   :  { %v675_v35 = vadd.f32 %v899_v33, %v674_v34  ;;  %v1038_v36 = vpop.f32.mrb[9].mxu1 }
 0x49f   :  { %v677_v37 = vpop.f32.mrb[10].mxu1 }
 0x4a0   :  { %v680_v38 = vmax.f32 %v675_v35, 0.0  ;;  %v1039_v39 = vpop.f32.mrb[11].mxu1 }
 0x4a2   :  { %v681_v40 = vpack.c.bf16 %v680_v38, %v680_v38 }
 0x4a4   :  { %823 = vmatmul.mubr.bf16.vlgmr.msra.gmra.mrb[8].mxu0 %v681_v40 }
 0x577   :  { %v824_v48 = vpop.f32.mrb[8].mxu0 }
 0x578   :  { %v825_v49 = vadd.f32 %v824_v48, %v703_v46  ;;  %v826_v50 = vpop.f32.mrb[9].mxu0 }
 0x579   :  { %v827_v51 = vadd.f32 %v826_v50, %v707_v47  ;;  %v828_v52 = vpop.f32.mrb[10].mxu0 }
 0x57a   :  { %v829_v53 = vpop.f32.mrb[11].mxu0 }
 0x57b   :  { %v833_v54 = vcombine.low %v825_v49, %v827_v51  ;;  %v834_v55 = vcombine.high %v825_v49, %v827_v51 }
 0x57d   :  { %840 = vst.msk [vmem:[#allocation8] sm:$0xff] %vm839_vm5, %v833_v54  ;;  %841 = vst.msk [vmem:[#allocation8 + $0x8] sm:$0xff] %vm839_vm5, %v834_v55 }
 0x57e   :  { %846 = vsyncadd [#allocation4], 128  ;;  %s1224_s10 = smov [#allocation8]  }
 0x57f   :  { %s847_s11 = sshll.u32 %s1224_s10, 4  ;;  %s848_s11 = int_to_ptr.vmem [resolvable:$true] %s847_s11 }
 0x580   :  { %s1186_s12 = scalar_lea.vmem %s848_s11, 128  ;;  %s1190_s24 = scalar_lea.vmem %s848_s11, 256 }
 0x581   :  { %p1187_p10 = scmp.ne.s32.totalorder %s848_s11, %s1186_s12  ;;  %p1191_p11 = scmp.lt.s32.totalorder %s848_s11, %s848_s11 }
 0x582   :  { %p1192_p12 = scmp.lt.s32.totalorder %s1190_s24, %s1186_s12 }
 0x584   :  { %p1193_p13 = por %p1192_p12, %p1191_p11 }
 0x586   :  { %p1194_p0 = pnand %p1193_p13, %p1187_p10 }
 0x588   :  { %1197 = shalt.err (!%p1194_p0)
}
 0x589   :  { %s1198_s28 = scalar_lea.hbm %s1564_s13, 128 }
 0x58a   :  { %p1199_p1 = scmp.ne.s32.totalorder %s1564_s13, %s1198_s28  ;;  %p1202_p2 = scmp.lt.u32.totalorder %s1198_s28, %s1564_s13 }
 0x58c   :  { %p1204_p3 = pnand %p1202_p2, %p1199_p1 }
 0x58e   :  { %1207 = shalt.err (!%p1204_p3)
}
 0x58f   :  { %853 = dma.vmem_to_hbm [thread:$0]  %s848_s11, 128, %s1564_s13, [#allocation4], %s1218_s26, %s1218_s26, %s1219_s16  }
 0x590   :  { %1212 = dma.done.wait [#allocation4], 256  }
 0x591   :  { %1213 = vsyncadd [#allocation4], 4294967040 }
 0x592   :  { %857 = vsyncpa [#allocation3], 1 }
 0x593   :  { %858 = vsyncpa [#allocation6], 1 }
 0x594   :  { %859 = vsyncpa [#allocation4], 1 }

</bundles_post_ra>
